<compile_context>
chip_gen: v7x
topology: tpu7x:2x2x1
jax: 0.10.0
libtpu: 0.0.40
codegen_flags: <defaults>
</compile_context>

<pallas_src>
import jax
import jax.numpy as jnp
from jax.experimental import pallas as pl
from jax.experimental.pallas import tpu as pltpu

KH = KW = 3


def _convt_sigmoid_kernel(wb_ref, x_ref, out_ref):
    # wb_ref:  (10,)   f32 SMEM -- raw ConvTranspose2d kernel (row-major kh,kw) + bias
    # x_ref:   (H, W)  f32 VMEM -- raw (unpadded) input plane
    # out_ref: (H, W)  f32 VMEM
    H, W = out_ref.shape
    x = x_ref[...]

    # Build the 1-pixel zero halo in-register (no HBM round-trip of a padded plane).
    zrow = jnp.zeros((1, W), x.dtype)
    xp = jnp.concatenate([zrow, x, zrow], axis=0)        # (H+2, W)
    zcol = jnp.zeros((H + 2, 1), x.dtype)
    xpad = jnp.concatenate([zcol, xp, zcol], axis=1)     # (H+2, W+2)

    # Stride-1 ConvTranspose2d(pad=1) == correlation of the zero-padded input with the
    # spatially flipped kernel; the flip is folded into reversed static weight indices.
    # Bias (wb_ref[9]) is folded into the accumulator init.
    acc = jnp.full((H, W), wb_ref[KH * KW], jnp.float32)
    for di in range(KH):
        for dj in range(KW):
            w = wb_ref[KW * (KH - 1 - di) + (KW - 1 - dj)]   # == w[KH-1-di, KW-1-dj]
            acc = acc + w * xpad[di:di + H, dj:dj + W]

    # sigmoid(z) = 0.5 * tanh(0.5 * z) + 0.5  -- one EUP op, full accuracy.
    out_ref[...] = 0.5 * jnp.tanh(0.5 * acc) + 0.5


def conv_transpose_sigmoid(x, weight, bias):
    """x: (N, 1, H, W) f32, weight: (1, 1, 3, 3) ConvTranspose2d layout, bias: (1,) f32."""
    N, C, H, W = x.shape
    assert C == 1
    assert x.dtype == jnp.float32, "kernel implemented for float32 inputs"

    # Single merged SMEM operand: [w00..w22, bias]  (one fewer tiny DMA descriptor).
    wb = jnp.concatenate(
        [weight.reshape(KH * KW).astype(jnp.float32), bias.reshape(1).astype(jnp.float32)]
    )

    cost = pl.CostEstimate(
        flops=2 * KH * KW * N * H * W,
        transcendentals=N * H * W,
        bytes_accessed=4 * (2 * N * H * W + KH * KW + 1),
    )

    if N == 1:
        # Gridless: a degenerate 1-step grid would pay pipeline setup for nothing.
        out = pl.pallas_call(
            _convt_sigmoid_kernel,
            out_shape=jax.ShapeDtypeStruct((H, W), jnp.float32),
            in_specs=[
                pl.BlockSpec(memory_space=pltpu.MemorySpace.SMEM),   # merged weight+bias
                pl.BlockSpec(memory_space=pltpu.MemorySpace.VMEM),   # input plane
            ],
            out_specs=pl.BlockSpec(memory_space=pltpu.MemorySpace.VMEM),
            cost_estimate=cost,
        )(wb, x.reshape(H, W))
        return out.reshape(N, 1, H, W)

    # Batched: one plane per grid step, parallel over N (sharded across TCs on v7x).
    out = pl.pallas_call(
        _convt_sigmoid_kernel,
        out_shape=jax.ShapeDtypeStruct((N, H, W), jnp.float32),
        grid=(N,),
        in_specs=[
            pl.BlockSpec(memory_space=pltpu.MemorySpace.SMEM),
            pl.BlockSpec((None, H, W), lambda n: (n, 0, 0)),
        ],
        out_specs=pl.BlockSpec((None, H, W), lambda n: (n, 0, 0)),
        cost_estimate=cost,
        compiler_params=pltpu.CompilerParams(dimension_semantics=("parallel",)),
    )(wb, x.reshape(N, H, W))
    return out.reshape(N, 1, H, W)


if __name__ == "__main__":
    key = jax.random.PRNGKey(0)
    kx, kw, kb, kx2 = jax.random.split(key, 4)

    # Input matches the PyTorch example: torch.randn(1, 1, 10, 10)
    x1 = jax.random.normal(kx, (1, 1, 10, 10), dtype=jnp.float32)

    # Deterministic parameter init (ConvTranspose2d weight shape (in, out/groups, kh, kw))
    bound = 1.0 / (1 * KH * KW) ** 0.5
    weight = jax.random.uniform(kw, (1, 1, KH, KW), jnp.float32, -bound, bound)
    bias = jax.random.uniform(kb, (1,), jnp.float32, -bound, bound)

    # XLA reference (different code path than the Pallas kernel).
    def xla_ref(x):
        w_oihw = jnp.flip(weight, axis=(-2, -1)).transpose(1, 0, 2, 3)  # (O, I, kh, kw)
        r = jax.lax.conv_general_dilated(
            x, w_oihw, window_strides=(1, 1), padding=((1, 1), (1, 1)),
            dimension_numbers=("NCHW", "OIHW", "NCHW"),
        ) + bias.reshape(1, 1, 1, 1)
        return jax.nn.sigmoid(r)

    y = jax.block_until_ready(conv_transpose_sigmoid(x1, weight, bias))
    assert y.shape == (1, 1, 10, 10)
    assert jnp.allclose(y, xla_ref(x1), atol=1e-5, rtol=1e-5), "mismatch vs XLA reference"

    # Batched path (grid over N, parallel) sanity-check.
    xb = jax.random.normal(kx2, (3, 1, 10, 10), dtype=jnp.float32)
    yb = jax.block_until_ready(conv_transpose_sigmoid(xb, weight, bias))
    assert yb.shape == (3, 1, 10, 10)
    assert jnp.allclose(yb, xla_ref(xb), atol=1e-5, rtol=1e-5), "batched mismatch vs XLA"

    print("KERNEL_OK")
</pallas_src>

<mosaic_0001>
module attributes {stable_mosaic.version = 11 : i64} {
  func.func @_convt_sigmoid_kernel(%arg0: memref<10xf32, #tpu.memory_space<smem>>, %arg1: memref<10x10xf32, #tpu.memory_space<vmem>>, %arg2: memref<10x10xf32, #tpu.memory_space<vmem>>) attributes {dimension_semantics = [], scalar_prefetch = 0 : i64, scratch_operands = 0 : i64, tpu.core_type = #tpu.core_type<tc>} {
    %c0 = arith.constant 0 : index
    %c0_0 = arith.constant 0 : index
    %0 = vector.load %arg1[%c0, %c0_0] : memref<10x10xf32, #tpu.memory_space<vmem>>, vector<10x10xf32>
    %cst = arith.constant 0.000000e+00 : f32
    %1 = vector.broadcast %cst : f32 to vector<1x10xf32>
    %2 = tpu.concatenate %1, %0, %1 in 0 : vector<1x10xf32>, vector<10x10xf32>, vector<1x10xf32> -> vector<12x10xf32>
    %cst_1 = arith.constant 0.000000e+00 : f32
    %3 = vector.broadcast %cst_1 : f32 to vector<12x1xf32>
    %4 = tpu.concatenate %3, %2, %3 in 1 : vector<12x1xf32>, vector<12x10xf32>, vector<12x1xf32> -> vector<12x12xf32>
    %c9 = arith.constant 9 : index
    %5 = memref.load %arg0[%c9] : memref<10xf32, #tpu.memory_space<smem>>
    %6 = vector.broadcast %5 : f32 to vector<10x10xf32>
    %c8 = arith.constant 8 : index
    %7 = memref.load %arg0[%c8] : memref<10xf32, #tpu.memory_space<smem>>
    %8 = vector.extract_strided_slice %4 {offsets = [0, 0], sizes = [10, 10], strides = [1, 1]} : vector<12x12xf32> to vector<10x10xf32>
    %9 = vector.broadcast %7 : f32 to vector<10x10xf32>
    %10 = arith.mulf %9, %8 : vector<10x10xf32>
    %11 = arith.addf %6, %10 : vector<10x10xf32>
    %c7 = arith.constant 7 : index
    %12 = memref.load %arg0[%c7] : memref<10xf32, #tpu.memory_space<smem>>
    %13 = vector.extract_strided_slice %4 {offsets = [0, 1], sizes = [10, 10], strides = [1, 1]} : vector<12x12xf32> to vector<10x10xf32>
    %14 = vector.broadcast %12 : f32 to vector<10x10xf32>
    %15 = arith.mulf %14, %13 : vector<10x10xf32>
    %16 = arith.addf %11, %15 : vector<10x10xf32>
    %c6 = arith.constant 6 : index
    %17 = memref.load %arg0[%c6] : memref<10xf32, #tpu.memory_space<smem>>
    %18 = vector.extract_strided_slice %4 {offsets = [0, 2], sizes = [10, 10], strides = [1, 1]} : vector<12x12xf32> to vector<10x10xf32>
    %19 = vector.broadcast %17 : f32 to vector<10x10xf32>
    %20 = arith.mulf %19, %18 : vector<10x10xf32>
    %21 = arith.addf %16, %20 : vector<10x10xf32>
    %c5 = arith.constant 5 : index
    %22 = memref.load %arg0[%c5] : memref<10xf32, #tpu.memory_space<smem>>
    %23 = vector.extract_strided_slice %4 {offsets = [1, 0], sizes = [10, 10], strides = [1, 1]} : vector<12x12xf32> to vector<10x10xf32>
    %24 = vector.broadcast %22 : f32 to vector<10x10xf32>
    %25 = arith.mulf %24, %23 : vector<10x10xf32>
    %26 = arith.addf %21, %25 : vector<10x10xf32>
    %c4 = arith.constant 4 : index
    %27 = memref.load %arg0[%c4] : memref<10xf32, #tpu.memory_space<smem>>
    %28 = vector.extract_strided_slice %4 {offsets = [1, 1], sizes = [10, 10], strides = [1, 1]} : vector<12x12xf32> to vector<10x10xf32>
    %29 = vector.broadcast %27 : f32 to vector<10x10xf32>
    %30 = arith.mulf %29, %28 : vector<10x10xf32>
    %31 = arith.addf %26, %30 : vector<10x10xf32>
    %c3 = arith.constant 3 : index
    %32 = memref.load %arg0[%c3] : memref<10xf32, #tpu.memory_space<smem>>
    %33 = vector.extract_strided_slice %4 {offsets = [1, 2], sizes = [10, 10], strides = [1, 1]} : vector<12x12xf32> to vector<10x10xf32>
    %34 = vector.broadcast %32 : f32 to vector<10x10xf32>
    %35 = arith.mulf %34, %33 : vector<10x10xf32>
    %36 = arith.addf %31, %35 : vector<10x10xf32>
    %c2 = arith.constant 2 : index
    %37 = memref.load %arg0[%c2] : memref<10xf32, #tpu.memory_space<smem>>
    %38 = vector.extract_strided_slice %4 {offsets = [2, 0], sizes = [10, 10], strides = [1, 1]} : vector<12x12xf32> to vector<10x10xf32>
    %39 = vector.broadcast %37 : f32 to vector<10x10xf32>
    %40 = arith.mulf %39, %38 : vector<10x10xf32>
    %41 = arith.addf %36, %40 : vector<10x10xf32>
    %c1 = arith.constant 1 : index
    %42 = memref.load %arg0[%c1] : memref<10xf32, #tpu.memory_space<smem>>
    %43 = vector.extract_strided_slice %4 {offsets = [2, 1], sizes = [10, 10], strides = [1, 1]} : vector<12x12xf32> to vector<10x10xf32>
    %44 = vector.broadcast %42 : f32 to vector<10x10xf32>
    %45 = arith.mulf %44, %43 : vector<10x10xf32>
    %46 = arith.addf %41, %45 : vector<10x10xf32>
    %c0_2 = arith.constant 0 : index
    %47 = memref.load %arg0[%c0_2] : memref<10xf32, #tpu.memory_space<smem>>
    %48 = vector.extract_strided_slice %4 {offsets = [2, 2], sizes = [10, 10], strides = [1, 1]} : vector<12x12xf32> to vector<10x10xf32>
    %49 = vector.broadcast %47 : f32 to vector<10x10xf32>
    %50 = arith.mulf %49, %48 : vector<10x10xf32>
    %51 = arith.addf %46, %50 : vector<10x10xf32>
    %cst_3 = arith.constant 5.000000e-01 : f32
    %52 = vector.broadcast %cst_3 : f32 to vector<10x10xf32>
    %53 = arith.mulf %52, %51 : vector<10x10xf32>
    %54 = math.tanh %53 : vector<10x10xf32>
    %cst_4 = arith.constant 5.000000e-01 : f32
    %55 = vector.broadcast %cst_4 : f32 to vector<10x10xf32>
    %56 = arith.mulf %55, %54 : vector<10x10xf32>
    %cst_5 = arith.constant 5.000000e-01 : f32
    %57 = vector.broadcast %cst_5 : f32 to vector<10x10xf32>
    %58 = arith.addf %56, %57 : vector<10x10xf32>
    %c0_6 = arith.constant 0 : index
    %c0_7 = arith.constant 0 : index
    %59 = vector.load %arg2[%c0_6, %c0_7] : memref<10x10xf32, #tpu.memory_space<vmem>>, vector<10x10xf32>
    tpu.vector_store %arg2[%c0_6, %c0_7], %58 {strides = array<i32>} : memref<10x10xf32, #tpu.memory_space<vmem>>, vector<10x10xf32>,
    return
  }
}

</mosaic_0001>

<bundles_post_ra>
// kernel: tpu_custom_call.1
= control target key start
LH: loop header
LB: loop body
LE: loop exit
PB: predicated region body
PF: predicated region fallthrough
CT: control target
= control target key end

     0   :  { %7 = vsyncpa [#allocation5], 0  ;;  %s424_s0 = inlined_call_operand.hbm [shape: f32[10], index: 0, kind: input, shape index: {}]   ;;  %s425_s1 = inlined_call_operand.hbm [shape: f32[10,10], index: 1, kind: input, shape index: {}]   ;;  %s426_s2 = inlined_call_operand.hbm [shape: f32[10,10], index: 2, kind: output, shape index: {}]  }
   0x1   :  { %8 = vsyncpa [#allocation3], 0 }
   0x2   :  { %9 = vsyncpa [#allocation4], 0  ;;  %s247_s11 = scalar_lea.hbm %s424_s0, 16 }
   0x3   :  { %p248_p0 = scmp.ne.s32.totalorder %s424_s0, %s247_s11  ;;  %p251_p1 = scmp.lt.u32.totalorder %s247_s11, %s424_s0 }
   0x5   :  { %p253_p2 = pnand %p251_p1, %p248_p0 }
   0x7   :  { %256 = shalt.err (!%p253_p2)
}
   0x8   :  { %s307_s16 = smov [#allocation2]   ;;  %s308_s19 = smov [#allocation6]  }
   0x9   :  { %17 = dma.hbm_to_smem %s424_s0, 16, %s307_s16, [#allocation5]  }
   0xa   :  { %s23_s20 = sshll.u32 %s308_s19, 4  ;;  %s257_s23 = scalar_lea.hbm %s425_s1, 256  ;;  %s24_s20 = int_to_ptr.vmem [resolvable:$true] %s23_s20 }
   0xb   :  { %p258_p3 = scmp.ne.s32.totalorder %s425_s1, %s257_s23  ;;  %p261_p4 = scmp.lt.u32.totalorder %s257_s23, %s425_s1 }
   0xd   :  { %p263_p5 = pnand %p261_p4, %p258_p3 }
   0xf   :  { %266 = shalt.err (!%p263_p5)
}
  0x10   :  { %s267_s28 = scalar_lea.vmem %s24_s20, 256  ;;  %p272_p7 = scmp.lt.s32.totalorder %s24_s20, %s24_s20 }
  0x11   :  { %p268_p6 = scmp.ne.s32.totalorder %s24_s20, %s267_s28  ;;  %p273_p8 = scmp.lt.s32.totalorder %s267_s28, %s267_s28 }
  0x13   :  { %p274_p9 = por %p273_p8, %p272_p7 }
  0x15   :  { %p275_p10 = pnand %p274_p9, %p268_p6 }
  0x17   :  { %278 = shalt.err (!%p275_p10)
}
  0x18   :  { %s309_s0 = smov 128   ;;  %s310_s29 = smov 8  }
  0x19   :  { %29 = dma.hbm_to_vmem [thread:$0]  %s425_s1, 256, %s24_s20, [#allocation3], %s309_s0, %s309_s0, %s310_s29  }
  0x1a   :  { %301 = dma.done.wait [#allocation5], 16  }
  0x1b   :  { %302 = vsyncadd [#allocation5], 4294967280 }
  0x1c   :  { %303 = dma.done.wait [#allocation3], 256  }
  0x1d   :  { %304 = vsyncadd [#allocation3], 4294967040 }
  0x1e   :  { %36 = sfence }
  0x1f   :  { %v37_v0 = vld [vmem:[#allocation6] sm:$0xff]  ;;  %vm41_vm0 = vcmask 1040384   ;;  %v38_v1 = vld [vmem:[#allocation6 + $0x8] sm:$0x3]  ;;  %vm48_vm1 = vcmask 1042432   ;;  %s311_s4 = smov 1  }
  0x20   :  { %v42_v2 = vrot.slane %v37_v0, 7  ;;  %v43_v3 = vrot.slane %v38_v1, 7  ;;  %s228_s5 = sld [smem:[#allocation2 + $0x7]]  ;;  %s357_s6 = sld [smem:[#allocation2 + $0x6]]  ;;  %vm58_vm2 = vcmask 7168   ;;  %vm61_vm3 = vcmask 89088  }
  0x21   :  { %s231_s1 = sld [smem:[#allocation2 + $0x4]]  ;;  %s359_s7 = sld [smem:[#allocation2 + $0x5]]  ;;  %vm106_vm4 = vcmask 1046528   ;;  %vm154_vm5 = vcmask 1045504   ;;  %vm204_vm6 = vcmask 80896   ;;  %vm206_vm7 = vcmask 74752  }
  0x22   :  { %v47_v4 = vsel %vm41_vm0, 0.0, %v42_v2  ;;  %v44_v5 = vsel %vm41_vm0, %v42_v2, %v43_v3  ;;  %s361_s8 = sld [smem:[#allocation2 + $0x2]]  ;;  %s363_s9 = sld [smem:[#allocation2 + $0x3]] }
  0x23   :  { %52 = vrot.lane.b32.xlu0 %v47_v4, %s311_s4  ;;  %v49_v6 = vsel %vm48_vm1, %v44_v5, 0.0  ;;  %s366_s10 = sld [smem:[#allocation2 + $0x1]]  ;;  %s312_s11 = smov 127  }
  0x24   :  { %s313_s12 = smov 126   ;;  %s380_s13 = sld [smem:[#allocation2]] }
  0x25   :  { %s227_s14 = sld [smem:[#allocation2 + $0x8]]  ;;  %s226_s15 = sld [smem:[#allocation2 + $0x9]] }
  0x26   :  { %v73_v8 = vstv %s228_s5  ;;  %v87_v9 = vstv %s357_s6  ;;  %s314_s16 = smov [#allocation7]  }
  0x27   :  { %54 = vrot.lane.b32.xlu0 %v49_v6, %s311_s4  ;;  %v115_v12 = vstv %s231_s1  ;;  %v101_v15 = vstv %s359_s7  ;;  %s213_s17 = sshll.u32 %s314_s16, 4  ;;  %s214_s17 = int_to_ptr.vmem [resolvable:$true] %s213_s17 }
  0x28   :  { %v149_v17 = vstv %s361_s8  ;;  %v132_v21 = vstv %s363_s9  ;;  %s279_s18 = scalar_lea.vmem %s214_s17, 256  ;;  %p284_p12 = scmp.lt.s32.totalorder %s214_s17, %s214_s17 }
  0x29   :  { %v163_v27 = vstv %s366_s10  ;;  %p280_p11 = scmp.ne.s32.totalorder %s214_s17, %s279_s18  ;;  %p285_p13 = scmp.lt.s32.totalorder %s279_s18, %s279_s18 }
  0x2a   :  { %v180_v45 = vstv %s380_s13 }
  0x2b   :  { %v67_v55 = vstv %s227_s14  ;;  %v65_v57 = vstv %s226_s15  ;;  %p286_p0 = por %p285_p13, %p284_p12 }
  0x2d   :  { %p287_p1 = pnand %p286_p0, %p280_p11 }
  0x95   :  { %v53_v7 = vpop.permute.xlu0 %52 }
  0x96   :  { %v59_v10 = vsel %vm58_vm2, 0.0, %v53_v7 }
  0x97   :  { %v369_v11 = vsel %vm61_vm3, %v59_v10, 0.0 }
  0x98   :  { %v74_v13 = vmul.f32 %v73_v8, %v369_v11  ;;  %v88_v14 = vmul.f32 %v87_v9, %v369_v11  ;;  %v116_v19 = vmul.f32 %v115_v12, %v369_v11  ;;  %v102_v22 = vmul.f32 %v101_v15, %v369_v11 }
  0x99   :  { %v55_v16 = vpop.permute.xlu0 %54  ;;  %v150_v26 = vmul.f32 %v149_v17, %v369_v11  ;;  %v133_v31 = vmul.f32 %v132_v21, %v369_v11  ;;  %v164_v43 = vmul.f32 %v163_v27, %v369_v11  ;;  %v181_v50 = vmul.f32 %v180_v45, %v369_v11 }
  0x9a   :  { %v60_v18 = vsel %vm58_vm2, 0.0, %v55_v16  ;;  %78 = vrot.lane.b32.xlu1 %v74_v13, %s312_s11  ;;  %92 = vrot.lane.b32.xlu0 %v88_v14, %s313_s12  ;;  %v120_v29 = vrot.slane %v116_v19, 1  ;;  %v107_v35 = vrot.slane %v102_v22, 1  ;;  %v68_v56 = vmul.f32 %v67_v55, %v369_v11 }
  0x9b   :  { %v63_v20 = vsel %vm61_vm3, %v60_v18, 0.0  ;;  %v155_v39 = vrot.slane %v150_v26, 2  ;;  %v137_v42 = vrot.slane %v133_v31, 1  ;;  %v168_v49 = vrot.slane %v164_v43, 2 }
  0x9c   :  { %v75_v23 = vmul.f32 %v73_v8, %v63_v20  ;;  %v117_v24 = vmul.f32 %v115_v12, %v63_v20  ;;  %v134_v25 = vmul.f32 %v132_v21, %v63_v20  ;;  %v103_v28 = vmul.f32 %v101_v15, %v63_v20 }
  0x9d   :  { %v387_v32 = vmul.f32 %v149_v17, %v63_v20  ;;  %v89_v33 = vmul.f32 %v87_v9, %v63_v20  ;;  %v165_v34 = vmul.f32 %v163_v27, %v63_v20  ;;  %v182_v48 = vmul.f32 %v180_v45, %v63_v20 }
  0x9e   :  { %80 = vrot.lane.b32.xlu1 %v75_v23, %s312_s11  ;;  %v121_v30 = vrot.slane %v117_v24, 1  ;;  %v108_v36 = vrot.slane %v103_v28, 1  ;;  %v138_v38 = vrot.slane %v134_v25, 1  ;;  %v185_v53 = vrot.slane %v181_v50, 2 }
  0x9f   :  { %v156_v40 = vrot.slane %v387_v32, 2  ;;  %v169_v47 = vrot.slane %v165_v34, 2  ;;  %v186_v52 = vrot.slane %v182_v48, 2  ;;  %v70_v58 = vadd.f32 %v68_v56, %v65_v57 }
  0xa0   :  { %v122_v37 = vsel %vm106_vm4, %v120_v29, %v121_v30  ;;  %v109_v41 = vsel %vm106_vm4, %v107_v35, %v108_v36  ;;  %v139_v46 = vsel %vm106_vm4, %v137_v42, %v138_v38  ;;  %v69_v61 = vmul.f32 %v67_v55, %v63_v20 }
  0xa1   :  { %123 = vrot.lane.b32.xlu0 %v122_v37, %s312_s11  ;;  %v157_v44 = vsel %vm154_vm5, %v155_v39, %v156_v40  ;;  %v170_v51 = vsel %vm154_vm5, %v168_v49, %v169_v47  ;;  %v187_v54 = vsel %vm154_vm5, %v185_v53, %v186_v52 }
  0xa2   :  { %94 = vrot.lane.b32.xlu1 %v89_v33, %s313_s12  ;;  %v71_v1 = vadd.f32 %v69_v61, %v65_v57 }
  0xa5   :  { %140 = vrot.lane.b32.xlu0 %v139_v46, %s313_s12 }
  0xa6   :  { %125 = vrot.lane.b32.xlu1 %v121_v30, %s312_s11 }
  0xa9   :  { %171 = vrot.lane.b32.xlu0 %v170_v51, %s312_s11 }
  0xaa   :  { %142 = vrot.lane.b32.xlu1 %v138_v38, %s313_s12 }
  0xad   :  { %188 = vrot.lane.b32.xlu0 %v187_v54, %s313_s12 }
  0xae   :  { %173 = vrot.lane.b32.xlu1 %v169_v47, %s312_s11 }
  0xb2   :  { %190 = vrot.lane.b32.xlu1 %v186_v52, %s313_s12 }
 0x10c   :  { %v79_v59 = vpop.permute.xlu1 %78  ;;  %v93_v62 = vpop.permute.xlu0 %92 }
 0x10d   :  { %v84_v60 = vadd.f32 %v79_v59, %v70_v58 }
 0x10f   :  { %v98_v63 = vadd.f32 %v93_v62, %v84_v60 }
 0x110   :  { %v81_v0 = vpop.permute.xlu1 %80 }
 0x111   :  { %v112_v2 = vadd.f32 %v109_v41, %v98_v63  ;;  %v85_v3 = vadd.f32 %v81_v0, %v71_v1 }
 0x113   :  { %v124_v4 = vpop.permute.xlu0 %123 }
 0x114   :  { %v95_v5 = vpop.permute.xlu1 %94  ;;  %v129_v7 = vadd.f32 %v124_v4, %v112_v2 }
 0x115   :  { %v99_v6 = vadd.f32 %v95_v5, %v85_v3 }
 0x117   :  { %v141_v8 = vpop.permute.xlu0 %140  ;;  %v113_v9 = vadd.f32 %v108_v36, %v99_v6 }
 0x118   :  { %v146_v10 = vadd.f32 %v141_v8, %v129_v7  ;;  %v126_v12 = vpop.permute.xlu1 %125 }
 0x119   :  { %v130_v13 = vadd.f32 %v126_v12, %v113_v9 }
 0x11a   :  { %v160_v11 = vadd.f32 %v157_v44, %v146_v10 }
 0x11b   :  { %v172_v14 = vpop.permute.xlu0 %171 }
 0x11c   :  { %v143_v15 = vpop.permute.xlu1 %142  ;;  %v177_v17 = vadd.f32 %v172_v14, %v160_v11 }
 0x11d   :  { %v147_v16 = vadd.f32 %v143_v15, %v130_v13 }
 0x11f   :  { %v189_v18 = vpop.permute.xlu0 %188  ;;  %v161_v19 = vadd.f32 %v156_v40, %v147_v16 }
 0x120   :  { %v194_v20 = vadd.f32 %v189_v18, %v177_v17  ;;  %v174_v21 = vpop.permute.xlu1 %173 }
 0x121   :  { %v178_v23 = vadd.f32 %v174_v21, %v161_v19 }
 0x122   :  { %v196_v22 = vmul.f32 0.5, %v194_v20 }
 0x124   :  { %243 = vtanh.f32 %v196_v22  ;;  %v191_v24 = vpop.permute.xlu1 %190 }
 0x125   :  { %v195_v25 = vadd.f32 %v191_v24, %v178_v23 }
 0x127   :  { %v197_v26 = vmul.f32 0.5, %v195_v25 }
 0x129   :  { %245 = vtanh.f32 %v197_v26 }
 0x12e   :  { %v244_v27 = vpop.eup %243 }
 0x12f   :  { %v200_v28 = vmul.f32 0.5, %v244_v27 }
 0x131   :  { %v202_v29 = vadd.f32 0.5, %v200_v28 }
 0x133   :  { %v246_v30 = vpop.eup %245  ;;  %205 = vst.msk [vmem:[#allocation7] sm:$0xff] %vm204_vm6, %v202_v29 }
 0x134   :  { %v201_v31 = vmul.f32 0.5, %v246_v30 }
 0x136   :  { %v203_v32 = vadd.f32 0.5, %v201_v31 }
 0x138   :  { %207 = vst.msk [vmem:[#allocation7 + $0x8] sm:$0x3] %vm206_vm7, %v203_v32 }
 0x139   :  { %290 = shalt.err (!%p287_p1)
}
 0x13a   :  { %s291_s21 = scalar_lea.hbm %s426_s2, 256 }
 0x13b   :  { %p292_p2 = scmp.ne.s32.totalorder %s426_s2, %s291_s21  ;;  %p295_p3 = scmp.lt.u32.totalorder %s291_s21, %s426_s2 }
 0x13d   :  { %p297_p4 = pnand %p295_p3, %p292_p2 }
 0x13f   :  { %300 = shalt.err (!%p297_p4)
}
 0x140   :  { %219 = dma.vmem_to_hbm [thread:$0]  %s214_s17, 256, %s426_s2, [#allocation4], %s309_s0, %s309_s0, %s310_s29  }
 0x141   :  { %305 = dma.done.wait [#allocation4], 256  }
 0x142   :  { %306 = vsyncadd [#allocation4], 4294967040 }
 0x143   :  { %223 = vsyncpa [#allocation3], 1 }
 0x144   :  { %224 = vsyncpa [#allocation4], 1 }
 0x145   :  { %225 = vsyncpa [#allocation5], 1 }

</bundles_post_ra>
